<compile_context>
chip_gen: v6e
topology: v6e:2x2x1
jax: 0.10.0
libtpu: 0.0.40
codegen_flags: <defaults>
</compile_context>

<pallas_src>
import math

import jax
import jax.numpy as jnp
from jax.experimental import pallas as pl
from jax.experimental.pallas import tpu as pltpu

_EPS = 1e-8
_LANE = 128
_SUB = 8
_ACC_SLABS = 8          # independent f32 accumulator slabs per parallel chunk


def _round_up(a, b):
    return (a + b - 1) // b * b


_TARGET_ROWS_CACHE = None


def _target_block_rows():
    """Rows (of 128 lanes) per input per grid block, by TPU generation."""
    global _TARGET_ROWS_CACHE
    if _TARGET_ROWS_CACHE is None:
        try:
            kind = jax.devices()[0].device_kind.lower()
        except Exception:
            kind = ""
        older = any(t in kind for t in ("v2", "v3", "v4", "v5"))
        # older gens (incl. v5e, 16 MiB default scoped VMEM): 2048 rows = 1 MiB f32/input
        # v6e / v7x: 8192 rows = 4 MiB f32/input -> 16 MiB double-buffered, fits the
        # 32 MiB default scoped VMEM on both, with headroom on v7x's 64 MiB physical.
        _TARGET_ROWS_CACHE = 2048 if older else 8192
    return _TARGET_ROWS_CACHE


def _powered(diff, mode, gamma):
    """diff is strictly positive f32; returns diff ** gamma for the given mode."""
    if mode == "square":
        return diff * diff                      # VPU only
    if mode == "linear":
        return diff
    if mode == "sqrt":
        return jnp.sqrt(diff)                   # 1 EUP op
    if mode == "sqrt3":
        return diff * jnp.sqrt(diff)            # 1 EUP op + 1 VPU mul
    # general positive base, dynamic float exponent -> exp/log on the EUP
    # TODO(synk): optional bf16 exp/log variant (v6e/v7x) would ~2x EUP throughput at
    # reduced precision; kept f32 here since this is a loss scalar.
    return jnp.exp(gamma * jnp.log(diff))


def _build_kernel(mode, block_rows, k_eff, chunks, rows_total, full_blocks, uniform):
    rk = block_rows // (_SUB * k_eff)

    def kernel(gamma_ref, x_ref, t_ref, o_ref):
        p = pl.program_id(0)
        i = pl.program_id(1)

        @pl.when(i == 0)
        def _init():
            o_ref[...] = jnp.zeros_like(o_ref)

        x = x_ref[...].astype(jnp.float32)
        t = t_ref[...].astype(jnp.float32)
        diff = jnp.abs(x - t) + jnp.float32(_EPS)          # strictly > 0
        gamma = gamma_ref[0]
        powered = _powered(diff, mode, gamma)              # (block_rows, 128) f32

        def accumulate(vals):
            # split rows into k_eff independent accumulation chains (ILP across the
            # 4 VALU slots); tile-aligned reshape (last two dims stay (8,128)) is free.
            o_ref[...] += vals.reshape(rk, k_eff, _SUB, _LANE).sum(axis=0)

        if uniform:
            # every grid block is fully inside the array: uniform fast path, no mask
            accumulate(powered)
        else:
            b = p * chunks + i                             # linear block index

            @pl.when(b < full_blocks)
            def _full():
                accumulate(powered)

            @pl.when(b >= full_blocks)
            def _partial():
                # partial (or phantom) block: mask rows beyond the valid prefix.
                # select AFTER the pow so NaN/Inf from the undefined padded region
                # of the DMA cannot leak into the sum.
                ri = jax.lax.broadcasted_iota(jnp.int32, (block_rows, _LANE), 0)
                valid = (b * block_rows + ri) < rows_total
                accumulate(jnp.where(valid, powered, jnp.float32(0.0)))

    return kernel


_FN_CACHE = {}


def _get_loss_fn(n, mode, in_dtype):
    in_dtype = jnp.dtype(in_dtype)
    key = (n, mode, in_dtype.name)
    fn = _FN_CACHE.get(key)
    if fn is not None:
        return fn

    itemsize = in_dtype.itemsize
    sub = 8 if itemsize >= 4 else 16            # native sublane tiling (f32 vs bf16/f16)
    tile_elems = sub * _LANE
    n_main = (n // tile_elems) * tile_elems     # tile-aligned prefix handled by Pallas
    rows_total = n_main // _LANE                # multiple of `sub`

    def _tail_sum(xr, tr, gamma):
        d = jnp.abs(xr.astype(jnp.float32) - tr.astype(jnp.float32)) + jnp.float32(_EPS)
        return jnp.sum(_powered(d, mode, gamma))

    if rows_total == 0:
        # fewer than one (sub,128) tile: plain XLA is the right tool
        def run_small(gamma_arr, x_flat, t_flat):
            return _tail_sum(x_flat, t_flat, gamma_arr[0])

        fn = jax.jit(run_small)
        _FN_CACHE[key] = fn
        return fn

    block_rows = min(_target_block_rows(), rows_total)
    if mode == "pow" and rows_total >= 2 * sub:
        # EUP-bound: force >=2 blocks so both v7x TensorCores take half the work
        block_rows = min(block_rows, _round_up(pl.cdiv(rows_total, 2), sub))

    num_blocks = pl.cdiv(rows_total, block_rows)
    n_parallel = 2 if num_blocks >= 2 else 1    # megacore split (v7x); no-op on 1 TC
    chunks = pl.cdiv(num_blocks, n_parallel)
    num_grid_blocks = n_parallel * chunks       # may exceed num_blocks by at most 1
    full_blocks = rows_total // block_rows      # blocks fully inside the array
    uniform = (num_grid_blocks == full_blocks)  # no partial and no phantom blocks

    k_eff = math.gcd(block_rows // _SUB, _ACC_SLABS)

    kernel = _build_kernel(mode, block_rows, k_eff, chunks, rows_total,
                           full_blocks, uniform)

    last_block = num_blocks - 1

    def in_map(p, i):
        # clamp phantom blocks onto the last real block: DMA always in bounds; the
        # kernel's b >= full_blocks mask makes their contribution exactly zero.
        return (jnp.minimum(p * chunks + i, last_block), 0)

    in_block = pl.BlockSpec((block_rows, _LANE), in_map)
    out_block = pl.BlockSpec((None, k_eff, _SUB, _LANE), lambda p, i: (p, 0, 0, 0))

    trans_per_elem = {"pow": 2, "sqrt": 1, "sqrt3": 1}.get(mode, 0)
    cost = pl.CostEstimate(
        flops=4 * n_main,
        transcendentals=trans_per_elem * n_main,
        bytes_accessed=2 * n_main * itemsize + 4 * n_parallel * k_eff * _SUB * _LANE)

    pcall = pl.pallas_call(
        kernel,
        out_shape=jax.ShapeDtypeStruct((n_parallel, k_eff, _SUB, _LANE), jnp.float32),
        grid=(n_parallel, chunks),
        in_specs=[
            pl.BlockSpec(memory_space=pltpu.MemorySpace.SMEM),   # gamma scalar
            in_block,                                            # input tile
            in_block,                                            # target tile
        ],
        out_specs=out_block,                                     # resident accumulators
        compiler_params=pltpu.CompilerParams(
            dimension_semantics=("parallel", "arbitrary")),
        cost_estimate=cost,
    )

    def run(gamma_arr, x_flat, t_flat):
        # contiguous slice + reshape of the aligned prefix: a view, not a copy (no pad)
        x2 = x_flat[:n_main].reshape(rows_total, _LANE)
        t2 = t_flat[:n_main].reshape(rows_total, _LANE)
        partials = pcall(gamma_arr, x2, t2)          # (n_parallel, k_eff, 8, 128)
        total = jnp.sum(partials)                    # tiny cross-slab/lane reduce in XLA
        if n_main < n:
            # sub-tile remainder (< sub*128 elements): plain XLA, fused into the jit
            total = total + _tail_sum(x_flat[n_main:], t_flat[n_main:], gamma_arr[0])
        return total

    fn = jax.jit(run)
    _FN_CACHE[key] = fn
    return fn


def l0_anneling_loss_pallas(input_v, target, gamma):
    """sum((|input - target| + eps) ** gamma) with the hot path in Pallas."""
    x = jnp.asarray(input_v)
    t = jnp.asarray(target)
    common = jnp.promote_types(x.dtype, t.dtype)
    if jnp.dtype(common).name not in ("float32", "bfloat16", "float16"):
        common = jnp.dtype(jnp.float32)
    # keep bf16/f16 native in HBM (half the streamed bytes); cast to f32 in-kernel
    x = x.reshape(-1).astype(common)
    t = t.reshape(-1).astype(common)
    n = x.shape[0]

    gamma = float(gamma)
    if n == 0:
        return jnp.float32(0.0)
    if gamma == 0.0:
        # (|x - t| + eps) ** 0 == 1 exactly, so the loss is just the element count.
        return jnp.asarray(float(n), dtype=jnp.float32)
    if gamma == 2.0:
        mode = "square"
    elif gamma == 1.0:
        mode = "linear"
    elif gamma == 0.5:
        mode = "sqrt"
    elif gamma == 1.5:
        mode = "sqrt3"
    else:
        mode = "pow"          # one compiled kernel reused for every annealed gamma

    fn = _get_loss_fn(n, mode, common)
    gamma_arr = jnp.asarray([gamma], dtype=jnp.float32)
    return fn(gamma_arr, x, t)


class L0AnnelingLoss:
    """Stateful wrapper mirroring the PyTorch module (gamma annealing is Python state)."""

    def __init__(self, anneling_rate=1 / 50):
        self.anneling_rate = anneling_rate
        self._n_calls = 0
        self._init_gamma = 2
        self._last_gamma = 0
        self._eps = 1e-8

    def __call__(self, input_v, target):
        gamma = max(self._init_gamma - self._n_calls * self.anneling_rate,
                    self._last_gamma)
        self._n_calls += 1
        return l0_anneling_loss_pallas(input_v, target, gamma)


if __name__ == "__main__":
    key = jax.random.PRNGKey(0)
    k1, k2, k3, k4, k5, k6 = jax.random.split(key, 6)

    def ref(inp, tgt, gamma):
        d = jnp.abs(inp.astype(jnp.float32) - tgt.astype(jnp.float32)) + _EPS
        return jnp.sum(d ** gamma)

    # NCHW-style loss input (2,4,16,16) = 2048 elements: tile-aligned, single block
    x = jax.random.normal(k1, (2, 4, 16, 16), dtype=jnp.float32)
    y = jax.random.normal(k2, (2, 4, 16, 16), dtype=jnp.float32)

    loss_mod = L0AnnelingLoss()
    out1 = loss_mod(x, y)          # gamma = 2.0  -> square fast path (no transcendentals)
    out2 = loss_mod(x, y)          # gamma = 1.98 -> general exp/log path, 2-way split
    jax.block_until_ready(out1)
    jax.block_until_ready(out2)
    g2 = 2.0 - 1 / 50
    assert jnp.allclose(out1, ref(x, y, 2.0), rtol=1e-4, atol=1e-3), (out1, ref(x, y, 2.0))
    assert jnp.allclose(out2, ref(x, y, g2), rtol=1e-4, atol=1e-3), (out2, ref(x, y, g2))

    # unaligned size (5 x 1043 = 5215): aligned-prefix kernel + XLA tail, and (for pow)
    # a forced 2-way split whose second block exercises the in-kernel row mask
    xo = jax.random.normal(k3, (5, 1043), dtype=jnp.float32)
    yo = jax.random.normal(k4, (5, 1043), dtype=jnp.float32)
    out3 = l0_anneling_loss_pallas(xo, yo, 1.37)   # pow path + partial-block mask
    out4 = l0_anneling_loss_pallas(xo, yo, 1.5)    # sqrt3 fast path
    out5 = l0_anneling_loss_pallas(xo, yo, 0.5)    # sqrt fast path
    out6 = l0_anneling_loss_pallas(xo, yo, 0.0)    # exact element count
    for o in (out3, out4, out5, out6):
        jax.block_until_ready(o)
    assert jnp.allclose(out3, ref(xo, yo, 1.37), rtol=1e-4, atol=1e-2), out3
    assert jnp.allclose(out4, ref(xo, yo, 1.5), rtol=1e-4, atol=1e-2), out4
    assert jnp.allclose(out5, ref(xo, yo, 0.5), rtol=1e-4, atol=1e-2), out5
    assert jnp.allclose(out6, float(xo.size)), out6

    # tiny input (< one 1024-element tile): pure-XLA fallback path
    xt = jax.random.normal(k5, (3, 5, 9, 7), dtype=jnp.float32)
    yt = jax.random.normal(k6, (3, 5, 9, 7), dtype=jnp.float32)
    out7 = l0_anneling_loss_pallas(xt, yt, 1.23)
    jax.block_until_ready(out7)
    assert jnp.allclose(out7, ref(xt, yt, 1.23), rtol=1e-4, atol=1e-2), out7

    # bf16 inputs stream natively (no wrapper upcast); math is f32 in-kernel
    xb = x.astype(jnp.bfloat16)
    yb = y.astype(jnp.bfloat16)
    out8 = l0_anneling_loss_pallas(xb, yb, 2.0)
    jax.block_until_ready(out8)
    assert jnp.allclose(out8, ref(xb, yb, 2.0), rtol=1e-3, atol=1e-1), out8

    print("KERNEL_OK")
</pallas_src>

<mosaic_0001>
module attributes {stable_mosaic.version = 11 : i64} {
  func.func @kernel(%arg0: i32, %arg1: i32, %arg2: memref<1xf32, #tpu.memory_space<smem>>, %arg3: memref<16x128xf32, #tpu.memory_space<vmem>>, %arg4: memref<16x128xf32, #tpu.memory_space<vmem>>, %arg5: memref<1x2x8x128xf32, #tpu.memory_space<vmem>>) attributes {dimension_semantics = [#tpu.dimension_semantics<parallel>, #tpu.dimension_semantics<arbitrary>], iteration_bounds = array<i64: 1, 1>, scalar_prefetch = 0 : i64, scratch_operands = 0 : i64, tpu.core_type = #tpu.core_type<tc>, window_params = [{transform_indices = @transform_0, window_bounds = array<i64: 1>}, {transform_indices = @transform_1, window_bounds = array<i64: 16, 128>}, {transform_indices = @transform_2, window_bounds = array<i64: 16, 128>}, {transform_indices = @transform_3, window_bounds = array<i64: 1, 2, 8, 128>}]} {
    %c0_i32 = arith.constant 0 : i32
    %0 = arith.cmpi eq, %arg1, %c0_i32 : i32
    %1 = arith.extui %0 : i1 to i32
    %c0_i32_0 = arith.constant 0 : i32
    %2 = arith.cmpi ne, %1, %c0_i32_0 : i32
    scf.if %2 {
      %cst_13 = arith.constant 0.000000e+00 : f32
      %18 = vector.broadcast %cst_13 : f32 to vector<2x8x128xf32>
      %c0_14 = arith.constant 0 : index
      %c0_15 = arith.constant 0 : index
      %c0_16 = arith.constant 0 : index
      %c0_17 = arith.constant 0 : index
      %19 = vector.load %arg5[%c0_14, %c0_15, %c0_16, %c0_17] : memref<1x2x8x128xf32, #tpu.memory_space<vmem>>, vector<1x2x8x128xf32>
      %20 = vector.shape_cast %19 : vector<1x2x8x128xf32> to vector<2x8x128xf32>
      %21 = vector.shape_cast %18 : vector<2x8x128xf32> to vector<1x2x8x128xf32>
      tpu.vector_store %arg5[%c0_14, %c0_15, %c0_16, %c0_17], %21 {strides = array<i32>} : memref<1x2x8x128xf32, #tpu.memory_space<vmem>>, vector<1x2x8x128xf32>,
    } else {
    }
    %c0 = arith.constant 0 : index
    %c0_1 = arith.constant 0 : index
    %3 = vector.load %arg3[%c0, %c0_1] : memref<16x128xf32, #tpu.memory_space<vmem>>, vector<16x128xf32>
    %c0_2 = arith.constant 0 : index
    %c0_3 = arith.constant 0 : index
    %4 = vector.load %arg4[%c0_2, %c0_3] : memref<16x128xf32, #tpu.memory_space<vmem>>, vector<16x128xf32>
    %5 = arith.subf %3, %4 : vector<16x128xf32>
    %6 = math.absf %5 : vector<16x128xf32>
    %cst = arith.constant 9.99999993E-9 : f32
    %7 = vector.broadcast %cst : f32 to vector<16x128xf32>
    %8 = arith.addf %6, %7 : vector<16x128xf32>
    %9 = arith.mulf %8, %8 : vector<16x128xf32>
    %c0_4 = arith.constant 0 : index
    %c0_5 = arith.constant 0 : index
    %c0_6 = arith.constant 0 : index
    %c0_7 = arith.constant 0 : index
    %10 = vector.load %arg5[%c0_4, %c0_5, %c0_6, %c0_7] : memref<1x2x8x128xf32, #tpu.memory_space<vmem>>, vector<1x2x8x128xf32>
    %11 = vector.shape_cast %10 : vector<1x2x8x128xf32> to vector<2x8x128xf32>
    %12 = vector.shape_cast %9 : vector<16x128xf32> to vector<1x2x8x128xf32>
    %cst_8 = arith.constant dense<0.000000e+00> : vector<2x8x128xf32>
    %13 = vector.multi_reduction <add>, %12, %cst_8 [0] : vector<1x2x8x128xf32> to vector<2x8x128xf32>
    %14 = arith.addf %11, %13 : vector<2x8x128xf32>
    %c0_9 = arith.constant 0 : index
    %c0_10 = arith.constant 0 : index
    %c0_11 = arith.constant 0 : index
    %c0_12 = arith.constant 0 : index
    %15 = vector.load %arg5[%c0_9, %c0_10, %c0_11, %c0_12] : memref<1x2x8x128xf32, #tpu.memory_space<vmem>>, vector<1x2x8x128xf32>
    %16 = vector.shape_cast %15 : vector<1x2x8x128xf32> to vector<2x8x128xf32>
    %17 = vector.shape_cast %14 : vector<2x8x128xf32> to vector<1x2x8x128xf32>
    tpu.vector_store %arg5[%c0_9, %c0_10, %c0_11, %c0_12], %17 {strides = array<i32>} : memref<1x2x8x128xf32, #tpu.memory_space<vmem>>, vector<1x2x8x128xf32>,
    return
  }
  func.func @transform_0(%arg0: i32, %arg1: i32) -> i32 {
    %c0_i32 = arith.constant 0 : i32
    %c0_i32_0 = arith.constant 0 : i32
    return %c0_i32 : i32
  }
  func.func @transform_1(%arg0: i32, %arg1: i32) -> (i32, i32) {
    %c1_i32 = arith.constant 1 : i32
    %0 = arith.muli %arg0, %c1_i32 : i32
    %1 = arith.addi %0, %arg1 : i32
    %c0_i32 = arith.constant 0 : i32
    %2 = arith.minsi %1, %c0_i32 : i32
    %c0_i32_0 = arith.constant 0 : i32
    %c0_i32_1 = arith.constant 0 : i32
    return %2, %c0_i32_0 : i32, i32
  }
  func.func @transform_2(%arg0: i32, %arg1: i32) -> (i32, i32) {
    %c1_i32 = arith.constant 1 : i32
    %0 = arith.muli %arg0, %c1_i32 : i32
    %1 = arith.addi %0, %arg1 : i32
    %c0_i32 = arith.constant 0 : i32
    %2 = arith.minsi %1, %c0_i32 : i32
    %c0_i32_0 = arith.constant 0 : i32
    %c0_i32_1 = arith.constant 0 : i32
    return %2, %c0_i32_0 : i32, i32
  }
  func.func @transform_3(%arg0: i32, %arg1: i32) -> (i32, i32, i32, i32) {
    %c0_i32 = arith.constant 0 : i32
    %c0_i32_0 = arith.constant 0 : i32
    %c0_i32_1 = arith.constant 0 : i32
    %c0_i32_2 = arith.constant 0 : i32
    return %arg0, %c0_i32, %c0_i32_0, %c0_i32_1 : i32, i32, i32, i32
  }
}

</mosaic_0001>

<bundles_post_ra>
// kernel: run.1
= control target key start
LH: loop header
LB: loop body
LE: loop exit
PB: predicated region body
PF: predicated region fallthrough
CT: control target
= control target key end

     0   :  { %9 = vsyncpa [#allocation4], 0  ;;  %s184_s0 = inlined_call_operand.<no memory space> [shape: f32[1], index: 0, kind: input, shape index: {}]   ;;  %s185_s1 = inlined_call_operand.hbm [shape: f32[16,128], index: 1, kind: input, shape index: {}]   ;;  %s186_s2 = inlined_call_operand.hbm [shape: f32[16,128], index: 2, kind: input, shape index: {}]   ;;  %s187_s3 = inlined_call_operand.vmem [shape: f32[1,2,8,128], index: 3, kind: output, shape index: {}]  }
   0x1   :  { %10 = vsyncpa [#allocation6], 0  ;;  %s148_s12 = smov [#allocation3]  }
   0x2   :  { %s24_s13 = sshll.u32 %s148_s12, 4  ;;  %s25_s13 = int_to_ptr.vmem [resolvable:$true] %s24_s13 }
   0x3   :  { %s112_s14 = scalar_lea.vmem %s25_s13, 256  ;;  %p117_p1 = scmp.lt.s32.totalorder %s25_s13, %s25_s13 }
   0x4   :  { %p113_p0 = scmp.ne.s32.totalorder %s25_s13, %s112_s14  ;;  %p118_p2 = scmp.lt.s32.totalorder %s112_s14, %s112_s14 }
   0x6   :  { %p119_p3 = por %p118_p2, %p117_p1 }
   0x8   :  { %p120_p4 = pnand %p119_p3, %p113_p0 }
   0xa   :  { %123 = shalt.err (!%p120_p4)
}
   0xb   :  { %s149_s0 = smov 128   ;;  %s150_s15 = smov 8  }
   0xc   :  { %30 = dma.hbm_to_vmem [thread:$0]  %s185_s1, 256, %s25_s13, [#allocation4], %s149_s0, %s149_s0, %s150_s15  }
   0xd   :  { %s151_s18 = smov [#allocation5]  }
   0xe   :  { %s42_s19 = sshll.u32 %s151_s18, 4  ;;  %s43_s19 = int_to_ptr.vmem [resolvable:$true] %s42_s19 }
   0xf   :  { %s132_s20 = scalar_lea.vmem %s43_s19, 256  ;;  %p137_p6 = scmp.lt.s32.totalorder %s43_s19, %s43_s19 }
  0x10   :  { %p133_p5 = scmp.ne.s32.totalorder %s43_s19, %s132_s20  ;;  %p138_p7 = scmp.lt.s32.totalorder %s132_s20, %s132_s20 }
  0x12   :  { %p139_p8 = por %p138_p7, %p137_p6 }
  0x14   :  { %p140_p9 = pnand %p139_p8, %p133_p5 }
  0x16   :  { %143 = shalt.err (!%p140_p9)
}
  0x17   :  { %48 = dma.hbm_to_vmem [thread:$0]  %s186_s2, 256, %s43_s19, [#allocation6], %s149_s0, %s149_s0, %s150_s15  }
  0x18   :  { %144 = dma.done.wait [#allocation4], 256  }
  0x19   :  { %145 = vsyncadd [#allocation4], 4294967040 }
  0x1a   :  { %146 = dma.done.wait [#allocation6], 256  }
  0x1b   :  { %147 = vsyncadd [#allocation6], 4294967040  ;;  %v69_v0 = vld [vmem:[#allocation3] sm:$0xff]  ;;  %v71_v1 = vld [vmem:[#allocation5] sm:$0xff] }
  0x1c   :  { %v70_v2 = vld [vmem:[#allocation3 + $0x8] sm:$0xff]  ;;  %v73_v3 = vsub.f32 %v69_v0, %v71_v1  ;;  %v72_v4 = vld [vmem:[#allocation5 + $0x8] sm:$0xff] }
  0x1d   :  { %v74_v5 = vsub.f32 %v70_v2, %v72_v4 }
  0x1e   :  { %v75_v6 = vand.u32 2147483647, %v73_v3 }
  0x1f   :  { %v76_v7 = vand.u32 2147483647, %v74_v5 }
  0x20   :  { %v77_v8 = vadd.f32 1e-08, %v75_v6 }
  0x21   :  { %v78_v9 = vadd.f32 1e-08, %v76_v7 }
  0x22   :  { %v79_v10 = vmul.f32 %v77_v8, %v77_v8 }
  0x23   :  { %v80_v11 = vmul.f32 %v78_v9, %v78_v9 }
  0x24   :  { %87 = vst [vmem:[%s187_s3] sm:$0xff] %v79_v10 }
  0x25   :  { %88 = vst [vmem:[%s187_s3 + $0x8] sm:$0xff] %v80_v11 }
  0x26   :  { %93 = vsyncpa [#allocation4], 1 }
  0x27   :  { %94 = vsyncpa [#allocation6], 1 }

</bundles_post_ra>
